<compile_context>
chip_gen: v7x
topology: tpu7x:2x2x1
jax: 0.10.0
libtpu: 0.0.40
codegen_flags: <defaults>
</compile_context>

<pallas_src>
import functools

import jax
import jax.numpy as jnp
from jax.experimental import pallas as pl
from jax.experimental.pallas import tpu as pltpu


def _round_up(x, m):
    return (x + m - 1) // m * m


def _row_tile(rows):
    """Largest row tile (multiple of 8) dividing `rows` with >= 2 grid steps."""
    for t in (2048, 1024, 512, 256, 128, 64, 32, 16, 8):
        if rows % t == 0 and rows // t >= 2:
            return t
    return rows


# ---------------------------------------------------------------------------
# Phase 1: convolution (fused-tap MXU matmuls) + BN statistics accumulation.
# ---------------------------------------------------------------------------
def _conv_stats_kernel(xw_ref, w_ref, y_ref, stats_ref, *, K, W):
    # xw_ref:    (1, (H+K-1)*W, K*C_in)  bf16  kw-folded, H-padded rows (1 image)
    # w_ref:     (K, K*C_in, C_out_p)    bf16  per-kh weight slab
    # y_ref:     (1, H*W, C_out_p)       f32   conv output rows for this image
    # stats_ref: (2, C_out_p)            f32   [sum; sumsq], resident across grid
    n = pl.program_id(0)

    @pl.when(n == 0)
    def _init():
        stats_ref[...] = jnp.zeros_like(stats_ref)

    hw = y_ref.shape[1]           # H * W
    c_out = y_ref.shape[2]        # padded C_out

    x_all = xw_ref[0]             # ((H+K-1)*W, K*C_in) bf16, one haloed image

    acc = jnp.zeros((hw, c_out), dtype=jnp.float32)
    for kh in range(K):           # K accumulated MXU matmuls, contraction K*C_in
        xk = x_all[kh * W:kh * W + hw, :]          # shifted row window (no copy of HBM)
        acc = acc + jnp.dot(xk, w_ref[kh], preferred_element_type=jnp.float32)

    y_ref[0] = acc
    # Per-channel batch-norm statistics, accumulated across the image grid.
    stats_ref[0:1, :] += jnp.sum(acc, axis=0, keepdims=True)
    stats_ref[1:2, :] += jnp.sum(acc * acc, axis=0, keepdims=True)


# ---------------------------------------------------------------------------
# Phase 2: normalize + fused affine + ReLU (row-tiled, fully parallel).
# ---------------------------------------------------------------------------
def _bn_relu_kernel(y_ref, stats_ref, gb_ref, o_ref, *, count, eps):
    # y_ref: (TR, C_out_p) f32; stats_ref/gb_ref: (2, C_out_p) f32
    inv_n = 1.0 / count
    mean = stats_ref[0:1, :] * inv_n
    var = stats_ref[1:2, :] * inv_n - mean * mean          # biased variance
    scale = gb_ref[0:1, :] * jax.lax.rsqrt(var + eps)      # gamma / sqrt(var+eps)
    shift = gb_ref[1:2, :] - mean * scale                  # beta - mean*scale
    o_ref[...] = jnp.maximum(y_ref[...] * scale + shift, 0.0).astype(o_ref.dtype)


def conv_block_forward(x_nchw, weight, bias, gamma, beta, eps=1e-5):
    """ConvBlock forward. x_nchw: (N, C_in, H, W); weight: (C_out, C_in, K, K).

    `bias` is accepted for interface parity but unused: a conv bias added before
    training-mode BatchNorm is exactly cancelled by the mean subtraction.
    """
    del bias
    N, C_in, H, W = x_nchw.shape
    C_out, _, K, _ = weight.shape
    pad = K // 2
    HP = H + 2 * pad
    C_out_p = _round_up(C_out, 128)        # lane-dense output / weight columns
    R = N * H * W
    compute_dtype = jnp.bfloat16           # MXU operands; accumulation is f32

    # ---- layout-only glue ---------------------------------------------------
    x = jnp.transpose(x_nchw, (0, 2, 3, 1)).astype(compute_dtype)         # NHWC
    xp = jnp.pad(x, ((0, 0), (pad, pad), (pad, pad), (0, 0)))             # (N,HP,W+2p,Cin)
    # Fold kw taps into the channel axis (Kx of a small bf16 tensor, instead of
    # the K*K f32 im2col blowup), then flatten (h, w) so each kh tap becomes a
    # contiguous row window inside the kernel.
    xw = jnp.concatenate([xp[:, :, kw:kw + W, :] for kw in range(K)], axis=-1)
    xw = xw.reshape(N, HP * W, K * C_in)                                  # (N, HP*W, K*Cin)

    w_t = jnp.transpose(weight, (2, 3, 1, 0)).astype(jnp.float32)         # (K,K,Cin,Cout)
    w_t = jnp.pad(w_t, ((0, 0), (0, 0), (0, 0), (0, C_out_p - C_out)))
    w_r = w_t.reshape(K, K * C_in, C_out_p).astype(compute_dtype)         # (K, K*Cin, Cout_p)

    gb = jnp.stack([
        jnp.pad(gamma.astype(jnp.float32), (0, C_out_p - C_out)),
        jnp.pad(beta.astype(jnp.float32), (0, C_out_p - C_out)),
    ], axis=0)                                                            # (2, Cout_p)

    # ---- phase 1: conv + BN statistics --------------------------------------
    # NOTE: for very large per-image H*W, additionally tile H with a (K-1)-row
    # halo (manual DMA); per-image blocks are plenty small for this module.
    conv_y, stats = pl.pallas_call(
        functools.partial(_conv_stats_kernel, K=K, W=W),
        out_shape=(
            jax.ShapeDtypeStruct((N, H * W, C_out_p), jnp.float32),
            jax.ShapeDtypeStruct((2, C_out_p), jnp.float32),
        ),
        grid=(N,),
        in_specs=[
            pl.BlockSpec((1, HP * W, K * C_in), lambda n: (n, 0, 0)),
            pl.BlockSpec((K, K * C_in, C_out_p), lambda n: (0, 0, 0)),
        ],
        out_specs=(
            pl.BlockSpec((1, H * W, C_out_p), lambda n: (n, 0, 0)),
            pl.BlockSpec((2, C_out_p), lambda n: (0, 0)),
        ),
        compiler_params=pltpu.CompilerParams(
            dimension_semantics=("arbitrary",)),     # stats accumulate across images
        cost_estimate=pl.CostEstimate(
            flops=2 * R * K * K * C_in * C_out_p,
            transcendentals=0,
            bytes_accessed=(xw.size * xw.dtype.itemsize
                            + w_r.size * w_r.dtype.itemsize
                            + R * C_out_p * 4),
        ),
    )(xw, w_r)

    # ---- phase 2: normalize + affine + ReLU (row-tiled, parallel) ------------
    y2 = conv_y.reshape(R, C_out_p)        # merge leading dims: free
    TR = _row_tile(R)
    out_p = pl.pallas_call(
        functools.partial(_bn_relu_kernel, count=float(R), eps=float(eps)),
        out_shape=jax.ShapeDtypeStruct((R, C_out_p), jnp.float32),
        grid=(R // TR,),
        in_specs=[
            pl.BlockSpec((TR, C_out_p), lambda i: (i, 0)),
            pl.BlockSpec((2, C_out_p), lambda i: (0, 0)),
            pl.BlockSpec((2, C_out_p), lambda i: (0, 0)),
        ],
        out_specs=pl.BlockSpec((TR, C_out_p), lambda i: (i, 0)),
        compiler_params=pltpu.CompilerParams(
            dimension_semantics=("parallel",)),      # megacore-shardable on v7x
    )(y2, stats, gb)

    # ---- back to NCHW, drop channel padding ----------------------------------
    out = out_p[:, :C_out].reshape(N, H, W, C_out)
    return jnp.transpose(out, (0, 3, 1, 2))


def _reference(x_nchw, weight, bias, gamma, beta, eps=1e-5):
    """Pure-JAX reference (conv + training-mode BN + ReLU), NCHW.

    Inputs are rounded to bf16 to match the kernel's MXU compute dtype; the conv
    bias is kept here to demonstrate that training-mode BN cancels it.
    """
    xr = x_nchw.astype(jnp.bfloat16).astype(jnp.float32)
    wr = weight.astype(jnp.bfloat16).astype(jnp.float32)
    y = jax.lax.conv_general_dilated(
        xr, wr, window_strides=(1, 1), padding="SAME",
        dimension_numbers=("NCHW", "OIHW", "NCHW"),
    ) + bias.reshape(1, -1, 1, 1)
    mean = jnp.mean(y, axis=(0, 2, 3), keepdims=True)
    var = jnp.mean((y - mean) ** 2, axis=(0, 2, 3), keepdims=True)
    y = (y - mean) * jax.lax.rsqrt(var + eps)
    y = y * gamma.reshape(1, -1, 1, 1) + beta.reshape(1, -1, 1, 1)
    return jnp.maximum(y, 0.0)


if __name__ == "__main__":
    # Small shapes consistent with the module.
    N, C_in, C_out, H, W, K = 2, 4, 8, 16, 16, 3

    key = jax.random.PRNGKey(0)
    kx, kw, kb, kg, kbe = jax.random.split(key, 5)

    x = jax.random.normal(kx, (N, C_in, H, W), dtype=jnp.float32)

    # Deterministic synthetic parameter init.
    fan_in = C_in * K * K
    bound = 1.0 / (fan_in ** 0.5)
    weight = jax.random.uniform(kw, (C_out, C_in, K, K), jnp.float32, -bound, bound)
    bias = jax.random.uniform(kb, (C_out,), jnp.float32, -bound, bound)
    gamma = 1.0 + 0.1 * jax.random.normal(kg, (C_out,), dtype=jnp.float32)
    beta = 0.1 * jax.random.normal(kbe, (C_out,), dtype=jnp.float32)

    fwd = jax.jit(conv_block_forward)
    out = jax.block_until_ready(fwd(x, weight, bias, gamma, beta))

    ref = _reference(x, weight, bias, gamma, beta)
    assert out.shape == (N, C_out, H, W)
    max_err = float(jnp.max(jnp.abs(out - ref)))
    assert jnp.allclose(out, ref, atol=1e-3, rtol=1e-3), max_err

    print("KERNEL_OK")
</pallas_src>

<mosaic_0001>
module attributes {stable_mosaic.version = 11 : i64} {
  func.func @_conv_stats_kernel(%arg0: i32, %arg1: memref<1x288x12xbf16, #tpu.memory_space<vmem>>, %arg2: memref<3x12x128xbf16, #tpu.memory_space<vmem>>, %arg3: memref<1x256x128xf32, #tpu.memory_space<vmem>>, %arg4: memref<2x128xf32, #tpu.memory_space<vmem>>) attributes {dimension_semantics = [#tpu.dimension_semantics<arbitrary>], iteration_bounds = array<i64: 2>, scalar_prefetch = 0 : i64, scratch_operands = 0 : i64, tpu.core_type = #tpu.core_type<tc>, window_params = [{transform_indices = @transform_0, window_bounds = array<i64: 1, 288, 12>}, {pipeline_mode = #tpu.pipeline_mode<synchronous>, transform_indices = @transform_1, window_bounds = array<i64: 3, 12, 128>}, {transform_indices = @transform_2, window_bounds = array<i64: 1, 256, 128>}, {pipeline_mode = #tpu.pipeline_mode<synchronous>, transform_indices = @transform_3, window_bounds = array<i64: 2, 128>}]} {
    %c0_i32 = arith.constant 0 : i32
    %0 = arith.cmpi eq, %arg0, %c0_i32 : i32
    %1 = arith.extui %0 : i1 to i32
    %c0_i32_0 = arith.constant 0 : i32
    %2 = arith.cmpi ne, %1, %c0_i32_0 : i32
    scf.if %2 {
      %cst_26 = arith.constant 0.000000e+00 : f32
      %35 = vector.broadcast %cst_26 : f32 to vector<2x128xf32>
      %c0_27 = arith.constant 0 : index
      %c0_28 = arith.constant 0 : index
      %36 = vector.load %arg4[%c0_27, %c0_28] : memref<2x128xf32, #tpu.memory_space<vmem>>, vector<2x128xf32>
      tpu.vector_store %arg4[%c0_27, %c0_28], %35 {strides = array<i32>} : memref<2x128xf32, #tpu.memory_space<vmem>>, vector<2x128xf32>,
    } else {
    }
    %c0 = arith.constant 0 : index
    %c0_1 = arith.constant 0 : index
    %c0_2 = arith.constant 0 : index
    %3 = vector.load %arg1[%c0, %c0_1, %c0_2] : memref<1x288x12xbf16, #tpu.memory_space<vmem>>, vector<1x288x12xbf16>
    %4 = vector.shape_cast %3 : vector<1x288x12xbf16> to vector<288x12xbf16>
    %cst = arith.constant 0.000000e+00 : f32
    %5 = vector.broadcast %cst : f32 to vector<256x128xf32>
    %6 = vector.extract_strided_slice %4 {offsets = [0, 0], sizes = [256, 12], strides = [1, 1]} : vector<288x12xbf16> to vector<256x12xbf16>
    %c0_3 = arith.constant 0 : index
    %c0_4 = arith.constant 0 : index
    %c0_5 = arith.constant 0 : index
    %7 = vector.load %arg2[%c0_3, %c0_4, %c0_5] : memref<3x12x128xbf16, #tpu.memory_space<vmem>>, vector<1x12x128xbf16>
    %8 = vector.shape_cast %7 : vector<1x12x128xbf16> to vector<12x128xbf16>
    %cst_6 = arith.constant dense<0.000000e+00> : vector<256x128xf32>
    %9 = tpu.matmul %6, %8, %cst_6 {dimension_numbers = #tpu.dot_dimension_numbers<[1], [0], [0], [1], [0, 0, 1, 1], [], []>} : vector<256x12xbf16>, vector<12x128xbf16>, vector<256x128xf32> -> vector<256x128xf32>
    %10 = arith.addf %5, %9 : vector<256x128xf32>
    %11 = vector.extract_strided_slice %4 {offsets = [16, 0], sizes = [256, 12], strides = [1, 1]} : vector<288x12xbf16> to vector<256x12xbf16>
    %c1 = arith.constant 1 : index
    %c0_7 = arith.constant 0 : index
    %c0_8 = arith.constant 0 : index
    %12 = vector.load %arg2[%c1, %c0_7, %c0_8] : memref<3x12x128xbf16, #tpu.memory_space<vmem>>, vector<1x12x128xbf16>
    %13 = vector.shape_cast %12 : vector<1x12x128xbf16> to vector<12x128xbf16>
    %cst_9 = arith.constant dense<0.000000e+00> : vector<256x128xf32>
    %14 = tpu.matmul %11, %13, %cst_9 {dimension_numbers = #tpu.dot_dimension_numbers<[1], [0], [0], [1], [0, 0, 1, 1], [], []>} : vector<256x12xbf16>, vector<12x128xbf16>, vector<256x128xf32> -> vector<256x128xf32>
    %15 = arith.addf %10, %14 : vector<256x128xf32>
    %16 = vector.extract_strided_slice %4 {offsets = [32, 0], sizes = [256, 12], strides = [1, 1]} : vector<288x12xbf16> to vector<256x12xbf16>
    %c2 = arith.constant 2 : index
    %c0_10 = arith.constant 0 : index
    %c0_11 = arith.constant 0 : index
    %17 = vector.load %arg2[%c2, %c0_10, %c0_11] : memref<3x12x128xbf16, #tpu.memory_space<vmem>>, vector<1x12x128xbf16>
    %18 = vector.shape_cast %17 : vector<1x12x128xbf16> to vector<12x128xbf16>
    %cst_12 = arith.constant dense<0.000000e+00> : vector<256x128xf32>
    %19 = tpu.matmul %16, %18, %cst_12 {dimension_numbers = #tpu.dot_dimension_numbers<[1], [0], [0], [1], [0, 0, 1, 1], [], []>} : vector<256x12xbf16>, vector<12x128xbf16>, vector<256x128xf32> -> vector<256x128xf32>
    %20 = arith.addf %15, %19 : vector<256x128xf32>
    %c0_13 = arith.constant 0 : index
    %c0_14 = arith.constant 0 : index
    %c0_15 = arith.constant 0 : index
    %21 = vector.load %arg3[%c0_13, %c0_14, %c0_15] : memref<1x256x128xf32, #tpu.memory_space<vmem>>, vector<1x256x128xf32>
    %22 = vector.shape_cast %21 : vector<1x256x128xf32> to vector<256x128xf32>
    %23 = vector.shape_cast %20 : vector<256x128xf32> to vector<1x256x128xf32>
    tpu.vector_store %arg3[%c0_13, %c0_14, %c0_15], %23 {strides = array<i32>} : memref<1x256x128xf32, #tpu.memory_space<vmem>>, vector<1x256x128xf32>,
    %c0_16 = arith.constant 0 : index
    %c0_17 = arith.constant 0 : index
    %24 = vector.load %arg4[%c0_16, %c0_17] : memref<2x128xf32, #tpu.memory_space<vmem>>, vector<1x128xf32>
    %cst_18 = arith.constant dense<0.000000e+00> : vector<128xf32>
    %25 = vector.multi_reduction <add>, %20, %cst_18 [0] : vector<256x128xf32> to vector<128xf32>
    %26 = vector.shape_cast %25 : vector<128xf32> to vector<1x128xf32>
    %27 = arith.addf %24, %26 : vector<1x128xf32>
    %c0_19 = arith.constant 0 : index
    %c0_20 = arith.constant 0 : index
    %28 = vector.load %arg4[%c0_19, %c0_20] : memref<2x128xf32, #tpu.memory_space<vmem>>, vector<1x128xf32>
    tpu.vector_store %arg4[%c0_19, %c0_20], %27 {strides = array<i32>} : memref<2x128xf32, #tpu.memory_space<vmem>>, vector<1x128xf32>,
    %c1_21 = arith.constant 1 : index
    %c0_22 = arith.constant 0 : index
    %29 = vector.load %arg4[%c1_21, %c0_22] : memref<2x128xf32, #tpu.memory_space<vmem>>, vector<1x128xf32>
    %30 = arith.mulf %20, %20 : vector<256x128xf32>
    %cst_23 = arith.constant dense<0.000000e+00> : vector<128xf32>
    %31 = vector.multi_reduction <add>, %30, %cst_23 [0] : vector<256x128xf32> to vector<128xf32>
    %32 = vector.shape_cast %31 : vector<128xf32> to vector<1x128xf32>
    %33 = arith.addf %29, %32 : vector<1x128xf32>
    %c1_24 = arith.constant 1 : index
    %c0_25 = arith.constant 0 : index
    %34 = vector.load %arg4[%c1_24, %c0_25] : memref<2x128xf32, #tpu.memory_space<vmem>>, vector<1x128xf32>
    tpu.vector_store %arg4[%c1_24, %c0_25], %33 {strides = array<i32>} : memref<2x128xf32, #tpu.memory_space<vmem>>, vector<1x128xf32>,
    return
  }
  func.func @transform_0(%arg0: i32) -> (i32, i32, i32) {
    %c0_i32 = arith.constant 0 : i32
    %c0_i32_0 = arith.constant 0 : i32
    %c0_i32_1 = arith.constant 0 : i32
    return %arg0, %c0_i32, %c0_i32_0 : i32, i32, i32
  }
  func.func @transform_1(%arg0: i32) -> (i32, i32, i32) {
    %c0_i32 = arith.constant 0 : i32
    %c0_i32_0 = arith.constant 0 : i32
    %c0_i32_1 = arith.constant 0 : i32
    %c0_i32_2 = arith.constant 0 : i32
    return %c0_i32, %c0_i32_0, %c0_i32_1 : i32, i32, i32
  }
  func.func @transform_2(%arg0: i32) -> (i32, i32, i32) {
    %c0_i32 = arith.constant 0 : i32
    %c0_i32_0 = arith.constant 0 : i32
    %c0_i32_1 = arith.constant 0 : i32
    return %arg0, %c0_i32, %c0_i32_0 : i32, i32, i32
  }
  func.func @transform_3(%arg0: i32) -> (i32, i32) {
    %c0_i32 = arith.constant 0 : i32
    %c0_i32_0 = arith.constant 0 : i32
    %c0_i32_1 = arith.constant 0 : i32
    return %c0_i32, %c0_i32_0 : i32, i32
  }
}

module attributes {stable_mosaic.version = 11 : i64} {
  func.func @_bn_relu_kernel(%arg0: i32, %arg1: memref<256x128xf32, #tpu.memory_space<vmem>>, %arg2: memref<2x128xf32, #tpu.memory_space<vmem>>, %arg3: memref<2x128xf32, #tpu.memory_space<vmem>>, %arg4: memref<256x128xf32, #tpu.memory_space<vmem>>) attributes {dimension_semantics = [#tpu.dimension_semantics<parallel>], iteration_bounds = array<i64: 2>, scalar_prefetch = 0 : i64, scratch_operands = 0 : i64, tpu.core_type = #tpu.core_type<tc>, window_params = [{transform_indices = @transform_0, window_bounds = array<i64: 256, 128>}, {pipeline_mode = #tpu.pipeline_mode<synchronous>, transform_indices = @transform_1, window_bounds = array<i64: 2, 128>}, {pipeline_mode = #tpu.pipeline_mode<synchronous>, transform_indices = @transform_2, window_bounds = array<i64: 2, 128>}, {transform_indices = @transform_3, window_bounds = array<i64: 256, 128>}]} {
    %c0 = arith.constant 0 : index
    %c0_0 = arith.constant 0 : index
    %0 = vector.load %arg2[%c0, %c0_0] : memref<2x128xf32, #tpu.memory_space<vmem>>, vector<1x128xf32>
    %cst = arith.constant 0.001953125 : f32
    %1 = vector.broadcast %cst : f32 to vector<1x128xf32>
    %2 = arith.mulf %0, %1 : vector<1x128xf32>
    %c1 = arith.constant 1 : index
    %c0_1 = arith.constant 0 : index
    %3 = vector.load %arg2[%c1, %c0_1] : memref<2x128xf32, #tpu.memory_space<vmem>>, vector<1x128xf32>
    %cst_2 = arith.constant 0.001953125 : f32
    %4 = vector.broadcast %cst_2 : f32 to vector<1x128xf32>
    %5 = arith.mulf %3, %4 : vector<1x128xf32>
    %6 = arith.mulf %2, %2 : vector<1x128xf32>
    %7 = arith.subf %5, %6 : vector<1x128xf32>
    %c0_3 = arith.constant 0 : index
    %c0_4 = arith.constant 0 : index
    %8 = vector.load %arg3[%c0_3, %c0_4] : memref<2x128xf32, #tpu.memory_space<vmem>>, vector<1x128xf32>
    %cst_5 = arith.constant 9.99999974E-6 : f32
    %9 = vector.broadcast %cst_5 : f32 to vector<1x128xf32>
    %10 = arith.addf %7, %9 : vector<1x128xf32>
    %11 = math.rsqrt %10 : vector<1x128xf32>
    %12 = arith.mulf %8, %11 : vector<1x128xf32>
    %c1_6 = arith.constant 1 : index
    %c0_7 = arith.constant 0 : index
    %13 = vector.load %arg3[%c1_6, %c0_7] : memref<2x128xf32, #tpu.memory_space<vmem>>, vector<1x128xf32>
    %14 = arith.mulf %2, %12 : vector<1x128xf32>
    %15 = arith.subf %13, %14 : vector<1x128xf32>
    %c0_8 = arith.constant 0 : index
    %c0_9 = arith.constant 0 : index
    %16 = vector.load %arg1[%c0_8, %c0_9] : memref<256x128xf32, #tpu.memory_space<vmem>>, vector<256x128xf32>
    %17 = vector.broadcast %12 : vector<1x128xf32> to vector<256x128xf32>
    %18 = arith.mulf %16, %17 : vector<256x128xf32>
    %19 = vector.broadcast %15 : vector<1x128xf32> to vector<256x128xf32>
    %20 = arith.addf %18, %19 : vector<256x128xf32>
    %cst_10 = arith.constant 0.000000e+00 : f32
    %21 = vector.broadcast %cst_10 : f32 to vector<256x128xf32>
    %22 = arith.maximumf %20, %21 : vector<256x128xf32>
    %c0_11 = arith.constant 0 : index
    %c0_12 = arith.constant 0 : index
    %23 = vector.load %arg4[%c0_11, %c0_12] : memref<256x128xf32, #tpu.memory_space<vmem>>, vector<256x128xf32>
    tpu.vector_store %arg4[%c0_11, %c0_12], %22 {strides = array<i32>} : memref<256x128xf32, #tpu.memory_space<vmem>>, vector<256x128xf32>,
    return
  }
  func.func @transform_0(%arg0: i32) -> (i32, i32) {
    %c0_i32 = arith.constant 0 : i32
    %c0_i32_0 = arith.constant 0 : i32
    return %arg0, %c0_i32 : i32, i32
  }
  func.func @transform_1(%arg0: i32) -> (i32, i32) {
    %c0_i32 = arith.constant 0 : i32
    %c0_i32_0 = arith.constant 0 : i32
    %c0_i32_1 = arith.constant 0 : i32
    return %c0_i32, %c0_i32_0 : i32, i32
  }
  func.func @transform_2(%arg0: i32) -> (i32, i32) {
    %c0_i32 = arith.constant 0 : i32
    %c0_i32_0 = arith.constant 0 : i32
    %c0_i32_1 = arith.constant 0 : i32
    return %c0_i32, %c0_i32_0 : i32, i32
  }
  func.func @transform_3(%arg0: i32) -> (i32, i32) {
    %c0_i32 = arith.constant 0 : i32
    %c0_i32_0 = arith.constant 0 : i32
    return %arg0, %c0_i32 : i32, i32
  }
}

</mosaic_0001>

<bundles_post_ra>
// kernel: conv_block_forward.3
= control target key start
LH: loop header
LB: loop body
LE: loop exit
PB: predicated region body
PF: predicated region fallthrough
CT: control target
= control target key end

     0   :  { %s460_s12 = smov 0   ;;  %s632_s0 = inlined_call_operand.vmem [shape: f32[512,128], index: 0, kind: input, shape index: {}]   ;;  %s633_s1 = inlined_call_operand.vmem [shape: f32[2,128], index: 1, kind: input, shape index: {}]   ;;  %s634_s2 = inlined_call_operand.vmem [shape: f32[2,128], index: 2, kind: input, shape index: {}]   ;;  %s635_s3 = inlined_call_operand.vmem [shape: f32[512,128], index: 3, kind: output, shape index: {}]  }
   0x1 LB: > { %s411_s13 = sadd.s32 4294967295, %s438_s12   ;;  %p415_p0 = scmp.ge.s32.totalorder %s438_s12, 1  ;;  %s438_s12 = sphi %s460_s12, %s13_s12  }
   0x2   : > { %p138_p1 = scmp.lt.s32.totalorder %s438_s12, 3 }
   0x4   : > { %p139_p2 = pnand %p415_p0, %p138_p1 }
   0x5   : > { %v174_v0 = vld [vmem:[%s633_s1] sm:$0x1] (!%p139_p2)  ;;  %v176_v1 = vld [vmem:[%s633_s1 + $0x1] sm:$0x1] (!%p139_p2)  ;;  %s416_s18 = sshll.u32 (!%p139_p2), %s411_s13, 5  ;;  %v219_v7 = vlaneseq (!%p139_p2) }
   0x6   : > { %142 = sbr.rel (%p139_p2) target bundleno = 59 (0x3b), region = 32  ;;  %v175_v2 = vmul.f32 (!%p139_p2), 0.001953125, %v174_v0  ;;  %v177_v3 = vmul.f32 (!%p139_p2), 0.001953125, %v176_v1  ;;  %p163_p3 = scmp.lt.s32.totalorder (!%p139_p2), %s416_s18, 63  ;;  %v180_v9 = vld [vmem:[%s634_s2] sm:$0x1] (!%p139_p2) }
   0x7   : > { %v220_v8 = vshrl.u32 (!%p139_p2), %v219_v7, 7  ;;  %v184_v13 = vld [vmem:[%s634_s2 + $0x1] sm:$0x1] (!%p139_p2) }
   0x8   : > { %v178_v4 = vmul.f32 (!%p139_p2), %v175_v2, %v175_v2 }
   0x9   : > { %v221_v10 = vsub.s32 (!%p139_p2), 0, %v220_v8 }
   0xa   : > { %v179_v5 = vsub.f32 (!%p139_p2), %v177_v3, %v178_v4 }
   0xc   : > { %v181_v6 = vadd.f32 (!%p139_p2), 1e-05, %v179_v5 }
   0xd   : > { %s637_s18 = smov (!%p163_p3, %s416_s18), 63 }
   0xe   : > { %430 = vrsqrt.f32 %v181_v6  ;;  %s417_s19 = sshll.u32 %s637_s18, 3 }
   0xf   : > { %s482_s22 = scalar_lea.vmem %s632_s0, %s417_s19  ;;  %s531_s29 = scalar_lea.vmem %s635_s3, %s417_s19 }
  0x10   : > { %v187_v14 = vld [vmem:[%s482_s22] sm:$0xff]  ;;  %v188_v15 = vld [vmem:[%s482_s22 + $0x8] sm:$0xff]  ;;  %v189_v16 = vld [vmem:[%s482_s22 + $0x10] sm:$0xff] }
  0x11   : > { %v190_v17 = vld [vmem:[%s482_s22 + $0x18] sm:$0xff]  ;;  %v191_v18 = vld [vmem:[%s482_s22 + $0x20] sm:$0xff]  ;;  %v192_v21 = vld [vmem:[%s482_s22 + $0x28] sm:$0xff] }
  0x12   : > { %v193_v22 = vld [vmem:[%s482_s22 + $0x30] sm:$0xff]  ;;  %v194_v23 = vld [vmem:[%s482_s22 + $0x38] sm:$0xff]  ;;  %v195_v24 = vld [vmem:[%s482_s22 + $0x40] sm:$0xff] }
  0x13   : > { %v196_v25 = vld [vmem:[%s482_s22 + $0x48] sm:$0xff]  ;;  %v197_v26 = vld [vmem:[%s482_s22 + $0x50] sm:$0xff]  ;;  %v198_v31 = vld [vmem:[%s482_s22 + $0x58] sm:$0xff] }
  0x14   : > { %v199_v32 = vld [vmem:[%s482_s22 + $0x60] sm:$0xff]  ;;  %v200_v33 = vld [vmem:[%s482_s22 + $0x68] sm:$0xff]  ;;  %v201_v58 = vld [vmem:[%s482_s22 + $0x70] sm:$0xff] }
  0x15   : > { %v202_v59 = vld [vmem:[%s482_s22 + $0x78] sm:$0xff]  ;;  %v203_v4 = vld [vmem:[%s482_s22 + $0x80] sm:$0xff] }
  0x18   : > { %v431_v11 = vpop.eup %430 }
  0x19   : > { %v183_v12 = vmul.f32 %v431_v11, %v180_v9  ;;  %v204_v9 = vld [vmem:[%s482_s22 + $0x88] sm:$0xff]  ;;  %v206_v11 = vld [vmem:[%s482_s22 + $0x98] sm:$0xff] }
  0x1b   : > { %v185_v19 = vmul.f32 %v183_v12, %v175_v2  ;;  %v495_v20 = vrot.slane %v183_v12, %v221_v10 }
  0x1d   : > { %v186_v27 = vsub.f32 %v184_v13, %v185_v19  ;;  %v223_v28 = vmul.f32 %v495_v20, %v187_v14  ;;  %v224_v29 = vmul.f32 %v495_v20, %v188_v15  ;;  %v225_v30 = vmul.f32 %v495_v20, %v189_v16  ;;  %v207_v16 = vld [vmem:[%s482_s22 + $0xa0] sm:$0xff] }
  0x1e   : > { %v226_v34 = vmul.f32 %v495_v20, %v190_v17  ;;  %v227_v35 = vmul.f32 %v495_v20, %v191_v18  ;;  %v228_v36 = vmul.f32 %v495_v20, %v192_v21  ;;  %v229_v37 = vmul.f32 %v495_v20, %v193_v22  ;;  %v208_v17 = vld [vmem:[%s482_s22 + $0xa8] sm:$0xff] }
  0x1f   : > { %v513_v38 = vrot.slane %v186_v27, %v221_v10  ;;  %v230_v39 = vmul.f32 %v495_v20, %v194_v23  ;;  %v231_v40 = vmul.f32 %v495_v20, %v195_v24  ;;  %v232_v41 = vmul.f32 %v495_v20, %v196_v25  ;;  %v205_v10 = vld [vmem:[%s482_s22 + $0x90] sm:$0xff] }
  0x20   : > { %v233_v42 = vmul.f32 %v495_v20, %v197_v26  ;;  %v234_v43 = vmul.f32 %v495_v20, %v198_v31  ;;  %v235_v44 = vmul.f32 %v495_v20, %v199_v32  ;;  %v236_v45 = vmul.f32 %v495_v20, %v200_v33  ;;  %v209_v27 = vld [vmem:[%s482_s22 + $0xb0] sm:$0xff] }
  0x21   : > { %v259_v46 = vadd.f32 %v513_v38, %v223_v28  ;;  %v260_v47 = vadd.f32 %v513_v38, %v224_v29  ;;  %v261_v48 = vadd.f32 %v513_v38, %v225_v30  ;;  %v262_v49 = vadd.f32 %v513_v38, %v226_v34  ;;  %v210_v28 = vld [vmem:[%s482_s22 + $0xb8] sm:$0xff] }
  0x22   : > { %v263_v50 = vadd.f32 %v513_v38, %v227_v35  ;;  %v264_v51 = vadd.f32 %v513_v38, %v228_v36  ;;  %v265_v52 = vadd.f32 %v513_v38, %v229_v37  ;;  %v266_v53 = vadd.f32 %v513_v38, %v230_v39  ;;  %v211_v37 = vld [vmem:[%s482_s22 + $0xc0] sm:$0xff] }
  0x23   : > { %v291_v54 = vmax.f32 %v259_v46, 0.0  ;;  %v292_v55 = vmax.f32 %v260_v47, 0.0  ;;  %v293_v56 = vmax.f32 %v261_v48, 0.0  ;;  %v294_v57 = vmax.f32 %v262_v49, 0.0 }
  0x24   : > { %v295_v60 = vmax.f32 %v263_v50, 0.0  ;;  %v296_v61 = vmax.f32 %v264_v51, 0.0  ;;  %v297_v62 = vmax.f32 %v265_v52, 0.0  ;;  %v298_v63 = vmax.f32 %v266_v53, 0.0  ;;  %v215_v50 = vld [vmem:[%s482_s22 + $0xe0] sm:$0xff]  ;;  %v216_v51 = vld [vmem:[%s482_s22 + $0xe8] sm:$0xff] }
  0x25   : > { %323 = vst [vmem:[%s531_s29] sm:$0xff] %v291_v54  ;;  %324 = vst [vmem:[%s531_s29 + $0x8] sm:$0xff] %v292_v55  ;;  %v267_v0 = vadd.f32 %v513_v38, %v231_v40  ;;  %v268_v1 = vadd.f32 %v513_v38, %v232_v41  ;;  %v269_v2 = vadd.f32 %v513_v38, %v233_v42 }
  0x26   : > { %325 = vst [vmem:[%s531_s29 + $0x10] sm:$0xff] %v293_v56  ;;  %326 = vst [vmem:[%s531_s29 + $0x18] sm:$0xff] %v294_v57  ;;  %v270_v3 = vadd.f32 %v513_v38, %v234_v43  ;;  %v271_v5 = vadd.f32 %v513_v38, %v235_v44  ;;  %v272_v6 = vadd.f32 %v513_v38, %v236_v45  ;;  %v212_v43 = vld [vmem:[%s482_s22 + $0xc8] sm:$0xff]  ;;  %v213_v44 = vld [vmem:[%s482_s22 + $0xd0] sm:$0xff] }
  0x27   : > { %327 = vst [vmem:[%s531_s29 + $0x20] sm:$0xff] %v295_v60  ;;  %328 = vst [vmem:[%s531_s29 + $0x28] sm:$0xff] %v296_v61  ;;  %v237_v7 = vmul.f32 %v495_v20, %v201_v58  ;;  %v238_v8 = vmul.f32 %v495_v20, %v202_v59  ;;  %v299_v12 = vmax.f32 %v267_v0, 0.0  ;;  %v300_v13 = vmax.f32 %v268_v1, 0.0  ;;  %v214_v45 = vld [vmem:[%s482_s22 + $0xd8] sm:$0xff]  ;;  %v217_v60 = vld [vmem:[%s482_s22 + $0xf0] sm:$0xff] }
  0x28   : > { %329 = vst [vmem:[%s531_s29 + $0x30] sm:$0xff] %v297_v62  ;;  %330 = vst [vmem:[%s531_s29 + $0x38] sm:$0xff] %v298_v63  ;;  %v301_v14 = vmax.f32 %v269_v2, 0.0  ;;  %v302_v15 = vmax.f32 %v270_v3, 0.0  ;;  %v303_v18 = vmax.f32 %v271_v5, 0.0  ;;  %v304_v19 = vmax.f32 %v272_v6, 0.0 }
  0x29   : > { %v273_v21 = vadd.f32 %v513_v38, %v237_v7  ;;  %v274_v22 = vadd.f32 %v513_v38, %v238_v8  ;;  %331 = vst [vmem:[%s531_s29 + $0x40] sm:$0xff] %v299_v12  ;;  %332 = vst [vmem:[%s531_s29 + $0x48] sm:$0xff] %v300_v13  ;;  %v239_v23 = vmul.f32 %v495_v20, %v203_v4  ;;  %v218_v61 = vld [vmem:[%s482_s22 + $0xf8] sm:$0xff] }
  0x2a   : > { %333 = vst [vmem:[%s531_s29 + $0x50] sm:$0xff] %v301_v14  ;;  %334 = vst [vmem:[%s531_s29 + $0x58] sm:$0xff] %v302_v15  ;;  %v240_v24 = vmul.f32 %v495_v20, %v204_v9  ;;  %v241_v25 = vmul.f32 %v495_v20, %v205_v10  ;;  %v242_v26 = vmul.f32 %v495_v20, %v206_v11 }
  0x2b   : > { %335 = vst [vmem:[%s531_s29 + $0x60] sm:$0xff] %v303_v18  ;;  %336 = vst [vmem:[%s531_s29 + $0x68] sm:$0xff] %v304_v19  ;;  %v305_v29 = vmax.f32 %v273_v21, 0.0  ;;  %v306_v30 = vmax.f32 %v274_v22, 0.0  ;;  %v243_v31 = vmul.f32 %v495_v20, %v207_v16  ;;  %v244_v32 = vmul.f32 %v495_v20, %v208_v17 }
  0x2c   : > { %v275_v33 = vadd.f32 %v513_v38, %v239_v23  ;;  %v276_v34 = vadd.f32 %v513_v38, %v240_v24  ;;  %v277_v35 = vadd.f32 %v513_v38, %v241_v25  ;;  %v278_v36 = vadd.f32 %v513_v38, %v242_v26 }
  0x2d   : > { %337 = vst [vmem:[%s531_s29 + $0x70] sm:$0xff] %v305_v29  ;;  %338 = vst [vmem:[%s531_s29 + $0x78] sm:$0xff] %v306_v30  ;;  %v279_v39 = vadd.f32 %v513_v38, %v243_v31  ;;  %v280_v40 = vadd.f32 %v513_v38, %v244_v32  ;;  %v245_v41 = vmul.f32 %v495_v20, %v209_v27 }
  0x2e   : > { %v246_v42 = vmul.f32 %v495_v20, %v210_v28  ;;  %v307_v46 = vmax.f32 %v275_v33, 0.0  ;;  %v308_v47 = vmax.f32 %v276_v34, 0.0  ;;  %v309_v48 = vmax.f32 %v277_v35, 0.0 }
  0x2f   : > { %v310_v49 = vmax.f32 %v278_v36, 0.0  ;;  %v311_v52 = vmax.f32 %v279_v39, 0.0  ;;  %v312_v53 = vmax.f32 %v280_v40, 0.0  ;;  %v281_v54 = vadd.f32 %v513_v38, %v245_v41 }
  0x30   : > { %v282_v55 = vadd.f32 %v513_v38, %v246_v42  ;;  %339 = vst [vmem:[%s531_s29 + $0x80] sm:$0xff] %v307_v46  ;;  %340 = vst [vmem:[%s531_s29 + $0x88] sm:$0xff] %v308_v47  ;;  %v247_v56 = vmul.f32 %v495_v20, %v211_v37  ;;  %v248_v57 = vmul.f32 %v495_v20, %v212_v43 }
  0x31   : > { %341 = vst [vmem:[%s531_s29 + $0x90] sm:$0xff] %v309_v48  ;;  %342 = vst [vmem:[%s531_s29 + $0x98] sm:$0xff] %v310_v49  ;;  %v249_v58 = vmul.f32 %v495_v20, %v213_v44  ;;  %v250_v59 = vmul.f32 %v495_v20, %v214_v45  ;;  %v313_v62 = vmax.f32 %v281_v54, 0.0  ;;  %v251_v0 = vmul.f32 %v495_v20, %v215_v50 }
  0x32   : > { %343 = vst [vmem:[%s531_s29 + $0xa0] sm:$0xff] %v311_v52  ;;  %344 = vst [vmem:[%s531_s29 + $0xa8] sm:$0xff] %v312_v53  ;;  %v314_v63 = vmax.f32 %v282_v55, 0.0  ;;  %v252_v1 = vmul.f32 %v495_v20, %v216_v51  ;;  %v283_v2 = vadd.f32 %v513_v38, %v247_v56  ;;  %v284_v3 = vadd.f32 %v513_v38, %v248_v57 }
  0x33   : > { %v285_v4 = vadd.f32 %v513_v38, %v249_v58  ;;  %v286_v5 = vadd.f32 %v513_v38, %v250_v59  ;;  %345 = vst [vmem:[%s531_s29 + $0xb0] sm:$0xff] %v313_v62  ;;  %v287_v6 = vadd.f32 %v513_v38, %v251_v0  ;;  %v253_v8 = vmul.f32 %v495_v20, %v217_v60 }
  0x34   : > { %346 = vst [vmem:[%s531_s29 + $0xb8] sm:$0xff] %v314_v63  ;;  %v288_v7 = vadd.f32 %v513_v38, %v252_v1  ;;  %v254_v9 = vmul.f32 %v495_v20, %v218_v61  ;;  %v315_v10 = vmax.f32 %v283_v2, 0.0  ;;  %v316_v11 = vmax.f32 %v284_v3, 0.0 }
  0x35   : > { %v317_v12 = vmax.f32 %v285_v4, 0.0  ;;  %v318_v13 = vmax.f32 %v286_v5, 0.0  ;;  %v319_v14 = vmax.f32 %v287_v6, 0.0  ;;  %v289_v16 = vadd.f32 %v513_v38, %v253_v8 }
  0x36   : > { %v320_v15 = vmax.f32 %v288_v7, 0.0  ;;  %v290_v17 = vadd.f32 %v513_v38, %v254_v9  ;;  %347 = vst [vmem:[%s531_s29 + $0xc0] sm:$0xff] %v315_v10  ;;  %348 = vst [vmem:[%s531_s29 + $0xc8] sm:$0xff] %v316_v11 }
  0x37   : > { %349 = vst [vmem:[%s531_s29 + $0xd0] sm:$0xff] %v317_v12  ;;  %350 = vst [vmem:[%s531_s29 + $0xd8] sm:$0xff] %v318_v13  ;;  %v321_v18 = vmax.f32 %v289_v16, 0.0 }
  0x38   : > { %351 = vst [vmem:[%s531_s29 + $0xe0] sm:$0xff] %v319_v14  ;;  %352 = vst [vmem:[%s531_s29 + $0xe8] sm:$0xff] %v320_v15  ;;  %v322_v20 = vmax.f32 %v290_v17, 0.0 }
  0x39   : > { %353 = vst [vmem:[%s531_s29 + $0xf0] sm:$0xff] %v321_v18 }
  0x3a   : > { %354 = vst [vmem:[%s531_s29 + $0xf8] sm:$0xff] %v322_v20 }
  0x3b PF: > { %s13_s12 = sadd.s32 1, %s438_s12  }
  0x3c   : > { %p10_p4 = scmp.ge.s32.totalorder %s13_s12, 4  }
  0x3e   :  { %12 = sbr.rel (!%p10_p4) target bundleno = 1 (0x1), region = 62 }

// kernel: conv_block_forward.2
= control target key start
LH: loop header
LB: loop body
LE: loop exit
PB: predicated region body
PF: predicated region fallthrough
CT: control target
= control target key end

     0   :  { %s1477_s12 = smov 0   ;;  %s1639_s0 = inlined_call_operand.vmem [shape: bf16[2,288,12], index: 0, kind: input, shape index: {}]   ;;  %s1640_s1 = inlined_call_operand.vmem [shape: bf16[3,12,128], index: 1, kind: input, shape index: {}]   ;;  %s1641_s2 = inlined_call_operand.vmem [shape: f32[2,256,128], index: 2, kind: output, shape index: {0}]   ;;  %s1642_s3 = inlined_call_operand.vmem [shape: f32[2,128], index: 3, kind: output, shape index: {1}]  }
   0x1 LB: > { %s1109_s13 = sadd.s32 4294967295, %s1454_s12   ;;  %p1113_p0 = scmp.ge.s32.totalorder %s1454_s12, 1  ;;  %s1454_s12 = sphi %s1477_s12, %s14_s12  }
   0x2   : > { %p135_p1 = scmp.lt.s32.totalorder %s1454_s12, 3 }
   0x4   : > { %p136_p2 = pnand %p1113_p0, %p135_p1 }
   0x5   : > { %p159_p3 = scmp.lt.s32.totalorder (!%p136_p2), %s1109_s13, 1  ;;  %p1117_p4 = scmp.ne.s32.totalorder (!%p136_p2), %s1109_s13, 0 }
   0x6   : > { %139 = sbr.rel (%p136_p2) target bundleno = 355 (0x163), region = 28 }
   0xd   : > { %s160_s14 = scalar_select %p159_p3, %s1109_s13, 1 }
   0xe   : > { %173 = sbr.rel (%p1117_p4) target bundleno = 21 (0x15), region = 32  ;;  %v1456_v0 = vmov (!%p1117_p4), 0.0  }
   0xf   : > { %s1417_s15 = smul.u32 144, %s160_s14  ;;  %s1193_s16 = sshll.u32 %s160_s14, 8  ;;  %174 = vst [vmem:[%s1642_s3] sm:$0x3] (!%p1117_p4), %v1456_v0 }
  0x10   : > { %s1488_s19 = scalar_lea.vmem %s1641_s2, %s1193_s16 }
  0x11   : > { %s1493_s22 = scalar_lea.vmem %s1639_s0, %s1417_s15 }
  0x15 PF: > { %v1427_v1 = vld [vmem:[%s1640_s1 + $0x8] sm:$0x3f]   ;;  %vm350_vm0 = vcmask 1045504   ;;  %v1428_v3 = vld [vmem:[%s1640_s1] sm:$0x3f]   ;;  %vm301_vm1 = vcmask 97280  }
  0x16   : > { %v1429_v2 = vld [vmem:[%s1493_s22 + $0x8] sm:$0xff]   ;;  %1413 = vmatprep.subr.msk.bf16.mxu1 %vm350_vm0, %v1427_v1  ;;  %v352_v4 = vsel %vm350_vm0, %v1427_v1, 0  ;;  %1414 = vmatprep.subr.msk.bf16.mxu0 %vm350_vm0, %v1428_v3  ;;  %v529_v5 = vsel %vm350_vm0, %v1428_v3, 0  ;;  %v1430_v6 = vld [vmem:[%s1493_s22] sm:$0xff]   ;;  %v1431_v7 = vld [vmem:[%s1493_s22 + $0x10] sm:$0xff]  }
  0x17   : > { %1246 = vmatpush3.bf16.msra.mxu1 %v352_v4  ;;  %1247 = vmatprep.mubr.msk.bf16.mxu1 %vm301_vm1, %v1429_v2  ;;  %v1432_v8 = vld [vmem:[%s1640_s1 + $0x10] sm:$0x3f]   ;;  %v1433_v9 = vld [vmem:[%s1493_s22 + $0x18] sm:$0xff]   ;;  %v1434_v11 = vld [vmem:[%s1493_s22 + $0x20] sm:$0xff]  }
  0x18   : > { %1415 = vmatprep.subr.msk.bf16.mxu1 %vm350_vm0, %v1428_v3  ;;  %1280 = vmatpush3.bf16.msra.mxu0 %v529_v5  ;;  %v709_v10 = vsel %vm350_vm0, %v1432_v8, 0  ;;  %v1435_v12 = vld [vmem:[%s1493_s22 + $0x28] sm:$0xff]   ;;  %v1436_v13 = vld [vmem:[%s1493_s22 + $0x30] sm:$0xff]   ;;  %v1437_v14 = vld [vmem:[%s1493_s22 + $0x38] sm:$0xff]  }
  0x19   : > { %1281 = vmatprep.mubr.msk.bf16.mxu0 %vm301_vm1, %v1430_v6  ;;  %1416 = vmatprep.subr.msk.bf16.mxu0 %vm350_vm0, %v1432_v8  ;;  %v1438_v15 = vld [vmem:[%s1493_s22 + $0x40] sm:$0xff]   ;;  %v1439_v16 = vld [vmem:[%s1493_s22 + $0x48] sm:$0xff]   ;;  %v1440_v17 = vld [vmem:[%s1493_s22 + $0x50] sm:$0xff]  }
  0x1a   : > { %1248 = vmatmul.mubr.msk.bf16.vlgmr.msra.gmra.mrb[0].mxu1 %vm301_vm1, %v1431_v7  ;;  %v1441_v18 = vld [vmem:[%s1493_s22 + $0x58] sm:$0xff]   ;;  %v1442_v19 = vld [vmem:[%s1493_s22 + $0x60] sm:$0xff]   ;;  %v1443_v20 = vld [vmem:[%s1493_s22 + $0x68] sm:$0xff]  }
  0x1b   : > { %1282 = vmatmul.mubr.msk.bf16.vlgmr.msra.gmra.mrb[0].mxu0 %vm301_vm1, %v1429_v2  ;;  %1348 = vmatpush3.bf16.msra.mxu1 %v529_v5  ;;  %v1444_v21 = vld [vmem:[%s1493_s22 + $0x70] sm:$0xff]   ;;  %v1445_v22 = vld [vmem:[%s1493_s22 + $0x78] sm:$0xff]   ;;  %v1446_v23 = vld [vmem:[%s1493_s22 + $0x80] sm:$0xff]  }
  0x1c   : > { %1314 = vmatpush3.bf16.msra.mxu0 %v709_v10  ;;  %1251 = vmatprep.mubr.msk.bf16.mxu1 %vm301_vm1, %v1433_v9  ;;  %v1447_v24 = vld [vmem:[%s1493_s22 + $0x88] sm:$0xff]  }
  0x1d   : > { %1285 = vmatprep.mubr.msk.bf16.mxu0 %vm301_vm1, %v1431_v7 }
  0x22   : > { %1252 = vmatmul.mubr.msk.bf16.gmra.mrb[4].mxu1 %vm301_vm1, %v1434_v11 }
  0x23   : > { %1286 = vmatmul.mubr.msk.bf16.gmra.mrb[4].mxu0 %vm301_vm1, %v1433_v9  ;;  %1255 = vmatprep.mubr.msk.bf16.mxu1 %vm301_vm1, %v1435_v12 }
  0x24   : > { %1289 = vmatprep.mubr.msk.bf16.mxu0 %vm301_vm1, %v1434_v11 }
  0x2a   : > { %1256 = vmatmul.mubr.msk.bf16.gmra.mrb[8].mxu1 %vm301_vm1, %v1436_v13 }
  0x2b   : > { %1290 = vmatmul.mubr.msk.bf16.gmra.mrb[8].mxu0 %vm301_vm1, %v1435_v12  ;;  %1259 = vmatprep.mubr.msk.bf16.mxu1 %vm301_vm1, %v1437_v14 }
  0x2c   : > { %1293 = vmatprep.mubr.msk.bf16.mxu0 %vm301_vm1, %v1436_v13 }
  0x32   : > { %1260 = vmatmul.mubr.msk.bf16.gmra.mrb[12].mxu1 %vm301_vm1, %v1438_v15 }
  0x33   : > { %1294 = vmatmul.mubr.msk.bf16.gmra.mrb[12].mxu0 %vm301_vm1, %v1437_v14  ;;  %1263 = vmatprep.mubr.msk.bf16.mxu1 %vm301_vm1, %v1439_v16 }
  0x34   : > { %1315 = vmatprep.mubr.msk.bf16.mxu0 %vm301_vm1, %v1431_v7 }
  0x3a   : > { %1264 = vmatmul.mubr.msk.bf16.gmra.mrb[16].mxu1 %vm301_vm1, %v1440_v17 }
  0x3b   : > { %1316 = vmatmul.mubr.msk.bf16.vlgmr.msra.gmra.mrb[0].mxu0 %vm301_vm1, %v1433_v9  ;;  %1267 = vmatprep.mubr.msk.bf16.mxu1 %vm301_vm1, %v1441_v18 }
  0x3c   : > { %1319 = vmatprep.mubr.msk.bf16.mxu0 %vm301_vm1, %v1434_v11 }
  0x42   : > { %1268 = vmatmul.mubr.msk.bf16.gmra.mrb[20].mxu1 %vm301_vm1, %v1442_v19 }
  0x43   : > { %1320 = vmatmul.mubr.msk.bf16.gmra.mrb[4].mxu0 %vm301_vm1, %v1435_v12  ;;  %1271 = vmatprep.mubr.msk.bf16.mxu1 %vm301_vm1, %v1443_v20 }
  0x44   : > { %1323 = vmatprep.mubr.msk.bf16.mxu0 %vm301_vm1, %v1436_v13 }
  0x4a   : > { %1272 = vmatmul.mubr.msk.bf16.gmra.mrb[24].mxu1 %vm301_vm1, %v1444_v21 }
  0x4b   : > { %1324 = vmatmul.mubr.msk.bf16.gmra.mrb[8].mxu0 %vm301_vm1, %v1437_v14  ;;  %1275 = vmatprep.mubr.msk.bf16.mxu1 %vm301_vm1, %v1445_v22 }
  0x4c   : > { %1327 = vmatprep.mubr.msk.bf16.mxu0 %vm301_vm1, %v1438_v15 }
  0x52   : > { %1276 = vmatmul.mubr.msk.bf16.gmra.mrb[28].mxu1 %vm301_vm1, %v1446_v23 }
  0x53   : > { %1328 = vmatmul.mubr.msk.bf16.gmra.mrb[12].mxu0 %vm301_vm1, %v1439_v16  ;;  %1297 = vmatprep.mubr.msk.bf16.mxu1 %vm301_vm1, %v1438_v15 }
  0x54   : > { %1331 = vmatprep.mubr.msk.bf16.mxu0 %vm301_vm1, %v1440_v17 }
  0x5a   : > { %1298 = vmatmul.mubr.msk.bf16.vlgmr.msra.gmra.mrb[16].mxu1 %vm301_vm1, %v1439_v16 }
  0x5b   : > { %1332 = vmatmul.mubr.msk.bf16.gmra.mrb[16].mxu0 %vm301_vm1, %v1441_v18  ;;  %1301 = vmatprep.mubr.msk.bf16.mxu1 %vm301_vm1, %v1440_v17 }
  0x5c   : > { %1335 = vmatprep.mubr.msk.bf16.mxu0 %vm301_vm1, %v1442_v19 }
  0x62   : > { %1302 = vmatmul.mubr.msk.bf16.gmra.mrb[20].mxu1 %vm301_vm1, %v1441_v18 }
  0x63   : > { %1336 = vmatmul.mubr.msk.bf16.gmra.mrb[20].mxu0 %vm301_vm1, %v1443_v20  ;;  %1305 = vmatprep.mubr.msk.bf16.mxu1 %vm301_vm1, %v1442_v19 }
  0x64   : > { %1339 = vmatprep.mubr.msk.bf16.mxu0 %vm301_vm1, %v1444_v21 }
  0x6a   : > { %1306 = vmatmul.mubr.msk.bf16.gmra.mrb[24].mxu1 %vm301_vm1, %v1443_v20 }
  0x6b   : > { %1340 = vmatmul.mubr.msk.bf16.gmra.mrb[24].mxu0 %vm301_vm1, %v1445_v22  ;;  %1309 = vmatprep.mubr.msk.bf16.mxu1 %vm301_vm1, %v1444_v21 }
  0x6c   : > { %1343 = vmatprep.mubr.msk.bf16.mxu0 %vm301_vm1, %v1446_v23 }
  0x72   : > { %1310 = vmatmul.mubr.msk.bf16.gmra.mrb[28].mxu1 %vm301_vm1, %v1445_v22 }
  0x73   : > { %1344 = vmatmul.mubr.msk.bf16.gmra.mrb[28].mxu0 %vm301_vm1, %v1447_v24 }
  0xed   : > { %v1249_v25 = vpop.f32.mrb[0].mxu1 }
  0xee   : > { %v388_v26 = vpop.f32.mrb[1].mxu1 }
  0xef   : > { %v1250_v27 = vpop.f32.mrb[2].mxu1 }
  0xf0   : > { %v391_v28 = vpop.f32.mrb[3].mxu1 }
  0xf5   : > { %v1253_v29 = vpop.f32.mrb[4].mxu1 }
  0xf6   : > { %v404_v30 = vpop.f32.mrb[5].mxu1 }
  0xf7   : > { %v1254_v31 = vpop.f32.mrb[6].mxu1 }
  0xf8   : > { %v407_v32 = vpop.f32.mrb[7].mxu1 }
  0xfd   : > { %v1257_v33 = vpop.f32.mrb[8].mxu1 }
  0xfe   : > { %v420_v34 = vpop.f32.mrb[9].mxu1 }
  0xff   : > { %v1258_v35 = vpop.f32.mrb[10].mxu1 }
 0x100   : > { %v423_v36 = vpop.f32.mrb[11].mxu1 }
 0x105   : > { %v1580_v37 = vpop.f32.mrb[12].mxu1 }
 0x106   : > { %v1582_v38 = vpop.f32.mrb[13].mxu1 }
 0x107   : > { %v1584_v39 = vpop.f32.mrb[14].mxu1 }
 0x108   : > { %v1586_v40 = vpop.f32.mrb[15].mxu1 }
 0x10e   : > { %v1317_v41 = vpop.f32.mrb[0].mxu0 }
 0x10f   : > { %v1349_v42 = vadd.f32 %v1317_v41, %v1249_v25  ;;  %v745_v43 = vpop.f32.mrb[1].mxu0 }
 0x110   : > { %v1350_v44 = vadd.f32 %v745_v43, %v388_v26  ;;  %v1318_v45 = vpop.f32.mrb[2].mxu0 }
 0x111   : > { %906 = vst [vmem:[%s1488_s19 + $0x10] sm:$0xff] %v1349_v42  ;;  %v1351_v46 = vadd.f32 %v1318_v45, %v1250_v27  ;;  %v748_v47 = vpop.f32.mrb[3].mxu0  ;;  %v979_v52 = vmul.f32 %v1349_v42, %v1349_v42 }
 0x112   : > { %904 = vst [vmem:[%s1488_s19] sm:$0xff] %v1350_v44  ;;  %v1352_v48 = vadd.f32 %v748_v47, %v391_v28  ;;  %v977_v49 = vmul.f32 %v1350_v44, %v1350_v44 }
 0x113   : > { %907 = vst [vmem:[%s1488_s19 + $0x18] sm:$0xff] %v1351_v46  ;;  %v980_v58 = vmul.f32 %v1351_v46, %v1351_v46 }
 0x114   : > { %905 = vst [vmem:[%s1488_s19 + $0x8] sm:$0xff] %v1352_v48  ;;  %v937_v50 = vadd.f32 %v1352_v48, %v1350_v44  ;;  %v978_v51 = vmul.f32 %v1352_v48, %v1352_v48 }
 0x116   : > { %v938_v53 = vadd.f32 %v1349_v42, %v937_v50  ;;  %v1009_v54 = vadd.f32 %v978_v51, %v977_v49  ;;  %v1321_v55 = vpop.f32.mrb[4].mxu0 }
 0x117   : > { %v1353_v56 = vadd.f32 %v1321_v55, %v1253_v29  ;;  %v761_v57 = vpop.f32.mrb[5].mxu0 }
 0x118   : > { %v1010_v59 = vadd.f32 %v1009_v54, %v979_v52  ;;  %v1354_v60 = vadd.f32 %v761_v57, %v404_v30  ;;  %v939_v61 = vadd.f32 %v1351_v46, %v938_v53  ;;  %v1322_v62 = vpop.f32.mrb[6].mxu0 }
 0x119   : > { %910 = vst [vmem:[%s1488_s19 + $0x30] sm:$0xff] %v1353_v56  ;;  %v1355_v63 = vadd.f32 %v1322_v62, %v1254_v31  ;;  %v764_v0 = vpop.f32.mrb[7].mxu0  ;;  %v983_v8 = vmul.f32 %v1353_v56, %v1353_v56 }
 0x11a   : > { %908 = vst [vmem:[%s1488_s19 + $0x20] sm:$0xff] %v1354_v60  ;;  %v940_v1 = vadd.f32 %v1354_v60, %v939_v61  ;;  %v981_v2 = vmul.f32 %v1354_v60, %v1354_v60  ;;  %v1011_v3 = vadd.f32 %v1010_v59, %v980_v58  ;;  %v1356_v4 = vadd.f32 %v764_v0, %v407_v32 }
 0x11b   : > { %911 = vst [vmem:[%s1488_s19 + $0x38] sm:$0xff] %v1355_v63  ;;  %v984_v14 = vmul.f32 %v1355_v63, %v1355_v63 }
 0x11c   : > { %v1012_v5 = vadd.f32 %v1011_v3, %v981_v2  ;;  %909 = vst [vmem:[%s1488_s19 + $0x28] sm:$0xff] %v1356_v4  ;;  %v941_v6 = vadd.f32 %v1356_v4, %v940_v1  ;;  %v982_v7 = vmul.f32 %v1356_v4, %v1356_v4 }
 0x11e   : > { %v942_v9 = vadd.f32 %v1353_v56, %v941_v6  ;;  %v1013_v10 = vadd.f32 %v1012_v5, %v982_v7  ;;  %v1325_v11 = vpop.f32.mrb[8].mxu0 }
 0x11f   : > { %v1357_v12 = vadd.f32 %v1325_v11, %v1257_v33  ;;  %v777_v13 = vpop.f32.mrb[9].mxu0 }
 0x120   : > { %v1014_v15 = vadd.f32 %v1013_v10, %v983_v8  ;;  %v1358_v16 = vadd.f32 %v777_v13, %v420_v34  ;;  %v943_v17 = vadd.f32 %v1355_v63, %v942_v9  ;;  %v1326_v18 = vpop.f32.mrb[10].mxu0 }
 0x121   : > { %914 = vst [vmem:[%s1488_s19 + $0x50] sm:$0xff] %v1357_v12  ;;  %v1359_v19 = vadd.f32 %v1326_v18, %v1258_v35  ;;  %v780_v20 = vpop.f32.mrb[11].mxu0  ;;  %v987_v28 = vmul.f32 %v1357_v12, %v1357_v12 }
 0x122   : > { %912 = vst [vmem:[%s1488_s19 + $0x40] sm:$0xff] %v1358_v16  ;;  %v944_v21 = vadd.f32 %v1358_v16, %v943_v17  ;;  %v985_v22 = vmul.f32 %v1358_v16, %v1358_v16  ;;  %v1015_v23 = vadd.f32 %v1014_v15, %v984_v14  ;;  %v1360_v24 = vadd.f32 %v780_v20, %v423_v36 }
 0x123   : > { %915 = vst [vmem:[%s1488_s19 + $0x58] sm:$0xff] %v1359_v19  ;;  %v988_v34 = vmul.f32 %v1359_v19, %v1359_v19 }
 0x124   : > { %v1016_v25 = vadd.f32 %v1015_v23, %v985_v22  ;;  %913 = vst [vmem:[%s1488_s19 + $0x48] sm:$0xff] %v1360_v24  ;;  %v945_v26 = vadd.f32 %v1360_v24, %v944_v21  ;;  %v986_v27 = vmul.f32 %v1360_v24, %v1360_v24 }
 0x126   : > { %v946_v29 = vadd.f32 %v1357_v12, %v945_v26  ;;  %v1017_v30 = vadd.f32 %v1016_v25, %v986_v27  ;;  %v1329_v31 = vpop.f32.mrb[12].mxu0 }
 0x127   : > { %v1361_v32 = vadd.f32 %v1329_v31, %v1580_v37  ;;  %v793_v33 = vpop.f32.mrb[13].mxu0 }
 0x128   : > { %v1018_v35 = vadd.f32 %v1017_v30, %v987_v28  ;;  %v1362_v36 = vadd.f32 %v793_v33, %v1582_v38  ;;  %v947_v41 = vadd.f32 %v1359_v19, %v946_v29  ;;  %v1330_v42 = vpop.f32.mrb[14].mxu0 }
 0x129   : > { %918 = vst [vmem:[%s1488_s19 + $0x70] sm:$0xff] %v1361_v32  ;;  %v1363_v43 = vadd.f32 %v1330_v42, %v1584_v39  ;;  %v796_v44 = vpop.f32.mrb[15].mxu0  ;;  %v991_v38 = vmul.f32 %v1361_v32, %v1361_v32 }
 0x12a   : > { %916 = vst [vmem:[%s1488_s19 + $0x60] sm:$0xff] %v1362_v36  ;;  %v948_v45 = vadd.f32 %v1362_v36, %v947_v41  ;;  %v989_v46 = vmul.f32 %v1362_v36, %v1362_v36  ;;  %v1019_v47 = vadd.f32 %v1018_v35, %v988_v34  ;;  %v1364_v48 = vadd.f32 %v796_v44, %v1586_v40 }
 0x12b   : > { %919 = vst [vmem:[%s1488_s19 + $0x78] sm:$0xff] %v1363_v43  ;;  %v992_v58 = vmul.f32 %v1363_v43, %v1363_v43 }
 0x12c   : > { %v1020_v37 = vadd.f32 %v1019_v47, %v989_v46  ;;  %917 = vst [vmem:[%s1488_s19 + $0x68] sm:$0xff] %v1364_v48  ;;  %v949_v49 = vadd.f32 %v1364_v48, %v948_v45  ;;  %v990_v50 = vmul.f32 %v1364_v48, %v1364_v48 }
 0x12d   : > { %v1299_v51 = vpop.f32.mrb[16].mxu1 }
 0x12e   : > { %v950_v52 = vadd.f32 %v1361_v32, %v949_v49  ;;  %v1021_v53 = vadd.f32 %v1020_v37, %v990_v50  ;;  %v1333_v54 = vpop.f32.mrb[16].mxu0  ;;  %v629_v39 = vpop.f32.mrb[17].mxu1 }
 0x12f   : > { %v1365_v55 = vadd.f32 %v1333_v54, %v1299_v51  ;;  %v809_v56 = vpop.f32.mrb[17].mxu0  ;;  %v1300_v57 = vpop.f32.mrb[18].mxu1 }
 0x130   : > { %v1022_v40 = vadd.f32 %v1021_v53, %v991_v38  ;;  %v1366_v59 = vadd.f32 %v809_v56, %v629_v39  ;;  %v951_v60 = vadd.f32 %v1363_v43, %v950_v52  ;;  %v1334_v61 = vpop.f32.mrb[18].mxu0  ;;  %v632_v62 = vpop.f32.mrb[19].mxu1 }
 0x131   : > { %922 = vst [vmem:[%s1488_s19 + $0x90] sm:$0xff] %v1365_v55  ;;  %v1367_v63 = vadd.f32 %v1334_v61, %v1300_v57  ;;  %v812_v0 = vpop.f32.mrb[19].mxu0  ;;  %v995_v9 = vmul.f32 %v1365_v55, %v1365_v55 }
 0x132   : > { %920 = vst [vmem:[%s1488_s19 + $0x80] sm:$0xff] %v1366_v59  ;;  %v952_v1 = vadd.f32 %v1366_v59, %v951_v60  ;;  %v993_v2 = vmul.f32 %v1366_v59, %v1366_v59  ;;  %v1023_v3 = vadd.f32 %v1022_v40, %v992_v58  ;;  %v1368_v4 = vadd.f32 %v812_v0, %v632_v62 }
 0x133   : > { %923 = vst [vmem:[%s1488_s19 + $0x98] sm:$0xff] %v1367_v63  ;;  %v996_v17 = vmul.f32 %v1367_v63, %v1367_v63 }
 0x134   : > { %v1024_v5 = vadd.f32 %v1023_v3, %v993_v2  ;;  %921 = vst [vmem:[%s1488_s19 + $0x88] sm:$0xff] %v1368_v4  ;;  %v953_v6 = vadd.f32 %v1368_v4, %v952_v1  ;;  %v994_v7 = vmul.f32 %v1368_v4, %v1368_v4 }
 0x135   : > { %v1303_v8 = vpop.f32.mrb[20].mxu1 }
 0x136   : > { %v954_v10 = vadd.f32 %v1365_v55, %v953_v6  ;;  %v1025_v11 = vadd.f32 %v1024_v5, %v994_v7  ;;  %v1337_v12 = vpop.f32.mrb[20].mxu0  ;;  %v645_v13 = vpop.f32.mrb[21].mxu1 }
 0x137   : > { %v1369_v14 = vadd.f32 %v1337_v12, %v1303_v8  ;;  %v825_v15 = vpop.f32.mrb[21].mxu0  ;;  %v1304_v16 = vpop.f32.mrb[22].mxu1 }
 0x138   : > { %v1026_v18 = vadd.f32 %v1025_v11, %v995_v9  ;;  %v1370_v19 = vadd.f32 %v825_v15, %v645_v13  ;;  %v955_v20 = vadd.f32 %v1367_v63, %v954_v10  ;;  %v1338_v21 = vpop.f32.mrb[22].mxu0  ;;  %v648_v22 = vpop.f32.mrb[23].mxu1 }
 0x139   : > { %926 = vst [vmem:[%s1488_s19 + $0xb0] sm:$0xff] %v1369_v14  ;;  %v1371_v23 = vadd.f32 %v1338_v21, %v1304_v16  ;;  %v828_v24 = vpop.f32.mrb[23].mxu0  ;;  %v999_v33 = vmul.f32 %v1369_v14, %v1369_v14 }
 0x13a   : > { %924 = vst [vmem:[%s1488_s19 + $0xa0] sm:$0xff] %v1370_v19  ;;  %v956_v25 = vadd.f32 %v1370_v19, %v955_v20  ;;  %v997_v26 = vmul.f32 %v1370_v19, %v1370_v19  ;;  %v1027_v27 = vadd.f32 %v1026_v18, %v996_v17  ;;  %v1372_v28 = vadd.f32 %v828_v24, %v648_v22 }
 0x13b   : > { %927 = vst [vmem:[%s1488_s19 + $0xb8] sm:$0xff] %v1371_v23  ;;  %v1000_v45 = vmul.f32 %v1371_v23, %v1371_v23 }
 0x13c   : > { %v1028_v29 = vadd.f32 %v1027_v27, %v997_v26  ;;  %925 = vst [vmem:[%s1488_s19 + $0xa8] sm:$0xff] %v1372_v28  ;;  %v957_v30 = vadd.f32 %v1372_v28, %v956_v25  ;;  %v998_v31 = vmul.f32 %v1372_v28, %v1372_v28 }
 0x13d   : > { %v1307_v32 = vpop.f32.mrb[24].mxu1 }
 0x13e   : > { %v958_v34 = vadd.f32 %v1369_v14, %v957_v30  ;;  %v1029_v35 = vadd.f32 %v1028_v29, %v998_v31  ;;  %v1341_v36 = vpop.f32.mrb[24].mxu0  ;;  %v661_v41 = vpop.f32.mrb[25].mxu1 }
 0x13f   : > { %v1373_v42 = vadd.f32 %v1341_v36, %v1307_v32  ;;  %v841_v43 = vpop.f32.mrb[25].mxu0  ;;  %v1308_v44 = vpop.f32.mrb[26].mxu1  ;;  %v936_v32 = vld [vmem:[%s1642_s3] sm:$0x1] }
 0x140   : > { %v1030_v46 = vadd.f32 %v1029_v35, %v999_v33  ;;  %v1374_v47 = vadd.f32 %v841_v43, %v661_v41  ;;  %v959_v48 = vadd.f32 %v1371_v23, %v958_v34  ;;  %v1342_v37 = vpop.f32.mrb[26].mxu0  ;;  %v664_v49 = vpop.f32.mrb[27].mxu1  ;;  %v976_v35 = vld [vmem:[%s1642_s3 + $0x1] sm:$0x1] }
 0x141   : > { %930 = vst [vmem:[%s1488_s19 + $0xd0] sm:$0xff] %v1373_v42  ;;  %v1375_v50 = vadd.f32 %v1342_v37, %v1308_v44  ;;  %v844_v51 = vpop.f32.mrb[27].mxu0  ;;  %v1003_v58 = vmul.f32 %v1373_v42, %v1373_v42 }
 0x142   : > { %928 = vst [vmem:[%s1488_s19 + $0xc0] sm:$0xff] %v1374_v47  ;;  %v960_v38 = vadd.f32 %v1374_v47, %v959_v48  ;;  %v1001_v52 = vmul.f32 %v1374_v47, %v1374_v47  ;;  %v1031_v53 = vadd.f32 %v1030_v46, %v1000_v45  ;;  %v1376_v54 = vadd.f32 %v844_v51, %v664_v49 }
 0x143   : > { %931 = vst [vmem:[%s1488_s19 + $0xd8] sm:$0xff] %v1375_v50  ;;  %v1004_v1 = vmul.f32 %v1375_v50, %v1375_v50 }
 0x144   : > { %v1032_v39 = vadd.f32 %v1031_v53, %v1001_v52  ;;  %929 = vst [vmem:[%s1488_s19 + $0xc8] sm:$0xff] %v1376_v54  ;;  %v961_v55 = vadd.f32 %v1376_v54, %v960_v38  ;;  %v1002_v56 = vmul.f32 %v1376_v54, %v1376_v54 }
 0x145   : > { %v1311_v57 = vpop.f32.mrb[28].mxu1 }
 0x146   : > { %v962_v40 = vadd.f32 %v1373_v42, %v961_v55  ;;  %v1033_v59 = vadd.f32 %v1032_v39, %v1002_v56  ;;  %v1345_v60 = vpop.f32.mrb[28].mxu0  ;;  %v677_v61 = vpop.f32.mrb[29].mxu1 }
 0x147   : > { %v1377_v62 = vadd.f32 %v1345_v60, %v1311_v57  ;;  %v857_v63 = vpop.f32.mrb[29].mxu0  ;;  %v1312_v0 = vpop.f32.mrb[30].mxu1 }
 0x148   : > { %v1034_v2 = vadd.f32 %v1033_v59, %v1003_v58  ;;  %v1378_v3 = vadd.f32 %v857_v63, %v677_v61  ;;  %v963_v4 = vadd.f32 %v1375_v50, %v962_v40  ;;  %v1346_v5 = vpop.f32.mrb[30].mxu0  ;;  %v680_v6 = vpop.f32.mrb[31].mxu1 }
 0x149   : > { %934 = vst [vmem:[%s1488_s19 + $0xf0] sm:$0xff] %v1377_v62  ;;  %v1379_v7 = vadd.f32 %v1346_v5, %v1312_v0  ;;  %v860_v8 = vpop.f32.mrb[31].mxu0  ;;  %v1007_v16 = vmul.f32 %v1377_v62, %v1377_v62 }
 0x14a   : > { %932 = vst [vmem:[%s1488_s19 + $0xe0] sm:$0xff] %v1378_v3  ;;  %v964_v9 = vadd.f32 %v1378_v3, %v963_v4  ;;  %v1005_v10 = vmul.f32 %v1378_v3, %v1378_v3  ;;  %v1035_v11 = vadd.f32 %v1034_v2, %v1004_v1  ;;  %v1380_v12 = vadd.f32 %v860_v8, %v680_v6 }
 0x14b   : > { %935 = vst [vmem:[%s1488_s19 + $0xf8] sm:$0xff] %v1379_v7  ;;  %v1008_v19 = vmul.f32 %v1379_v7, %v1379_v7 }
 0x14c   : > { %v1036_v13 = vadd.f32 %v1035_v11, %v1005_v10  ;;  %933 = vst [vmem:[%s1488_s19 + $0xe8] sm:$0xff] %v1380_v12  ;;  %v965_v14 = vadd.f32 %v1380_v12, %v964_v9  ;;  %v1006_v15 = vmul.f32 %v1380_v12, %v1380_v12 }
 0x14e   : > { %v966_v17 = vadd.f32 %v1377_v62, %v965_v14  ;;  %v1037_v18 = vadd.f32 %v1036_v13, %v1006_v15 }
 0x150   : > { %v967_v20 = vadd.f32 %v1379_v7, %v966_v17  ;;  %v1038_v21 = vadd.f32 %v1037_v18, %v1007_v16 }
 0x152   : > { %v968_v22 = vrot.slane %v967_v20, 4  ;;  %v1039_v23 = vadd.f32 %v1038_v21, %v1008_v19 }
 0x154   : > { %v969_v24 = vadd.f32 %v968_v22, %v967_v20  ;;  %v1040_v25 = vrot.slane %v1039_v23, 4 }
 0x156   : > { %v970_v26 = vrot.slane %v969_v24, 2  ;;  %v1041_v27 = vadd.f32 %v1040_v25, %v1039_v23 }
 0x158   : > { %v971_v28 = vadd.f32 %v970_v26, %v969_v24  ;;  %v1042_v29 = vrot.slane %v1041_v27, 2 }
 0x15a   : > { %v972_v30 = vrot.slane %v971_v28, 1  ;;  %v1043_v31 = vadd.f32 %v1042_v29, %v1041_v27 }
 0x15c   : > { %v973_v33 = vadd.f32 %v972_v30, %v971_v28  ;;  %v1044_v34 = vrot.slane %v1043_v31, 1 }
 0x15e   : > { %v974_v36 = vadd.f32 %v973_v33, %v936_v32  ;;  %v1045_v41 = vadd.f32 %v1044_v34, %v1043_v31 }
 0x160   : > { %975 = vst [vmem:[%s1642_s3] sm:$0x1] %v974_v36  ;;  %v1046_v42 = vadd.f32 %v1045_v41, %v976_v35 }
 0x162   : > { %1047 = vst [vmem:[%s1642_s3 + $0x1] sm:$0x1] %v1046_v42 }
 0x163 PF: > { %s14_s12 = sadd.s32 1, %s1454_s12  }
 0x164   : > { %p11_p5 = scmp.ge.s32.totalorder %s14_s12, 4  }
 0x166   :  { %13 = sbr.rel (!%p11_p5) target bundleno = 1 (0x1), region = 72 }

</bundles_post_ra>
